<compile_context>
chip_gen: v7x
topology: tpu7x:2x2x1
jax: 0.10.0
libtpu: 0.0.40
codegen_flags: <defaults>
</compile_context>

<pallas_src>
import functools
import math

import jax
import jax.numpy as jnp
from jax.experimental import pallas as pl
from jax.experimental.pallas import tpu as pltpu


def _attention_kernel(x_ref, wqkv_ref, bqkv_ref, wout_ref, bout_ref, o_ref,
                      merged_ref, *, heads):
    """Fused multi-head self-attention for one batch element.

    x_ref:      (N, D)       tokens of this batch element
    wqkv_ref:   (D, 3*D)     QKV projection weight (x @ W layout, Q pre-scaled)
    bqkv_ref:   (1, 3*D)     QKV projection bias   (Q part pre-scaled)
    wout_ref:   (D, D)       output projection weight
    bout_ref:   (1, D)       output projection bias
    o_ref:      (N, D)       output tokens
    merged_ref: (N, D) f32   VMEM scratch holding concatenated head outputs
    """
    x = x_ref[...].astype(jnp.float32)
    wqkv = wqkv_ref[...].astype(jnp.float32)
    bqkv = bqkv_ref[...].astype(jnp.float32)

    # QKV projection: one wide MXU matmul (best MXU utilization), stays in VMEM.
    qkv = jnp.dot(x, wqkv, preferred_element_type=jnp.float32) + bqkv  # (N, 3D)

    n, d_model = x.shape
    d_head = d_model // heads

    # Per-head scaled-dot-product attention (heads statically unrolled).
    # The scale is already folded into the Q projection.
    for h in range(heads):
        lo = h * d_head
        qh = qkv[:, lo:lo + d_head]                                    # (N, dh)
        kh = qkv[:, d_model + lo:d_model + lo + d_head]                # (N, dh)
        vh = qkv[:, 2 * d_model + lo:2 * d_model + lo + d_head]        # (N, dh)

        dots = jnp.einsum('id,jd->ij', qh, kh,
                          preferred_element_type=jnp.float32)          # (N, N)
        dots = dots - jnp.max(dots, axis=-1, keepdims=True)
        p = jnp.exp(dots)
        # Divide -> EUP reciprocal + VPU multiply (cheaper than a true divide).
        p = p * pl.reciprocal(jnp.sum(p, axis=-1, keepdims=True), approx=True)
        merged_ref[:, lo:lo + d_head] = jnp.dot(
            p, vh, preferred_element_type=jnp.float32)                 # (N, dh)

    # Output projection: single (N, D) x (D, D) MXU matmul.
    wout = wout_ref[...].astype(jnp.float32)
    bout = bout_ref[...].astype(jnp.float32)
    out = jnp.dot(merged_ref[...], wout,
                  preferred_element_type=jnp.float32) + bout           # (N, D)
    o_ref[...] = out.astype(o_ref.dtype)


def pallas_attention(x, w_qkv, b_qkv, w_out, b_out, *, heads, scale):
    """Multi-head self-attention (QKV proj + softmax attn + output proj)."""
    b, n, d = x.shape
    assert d % heads == 0, "dim must be divisible by heads"

    # Fold the softmax scale into the Q projection (weight-side, one tiny op):
    #   (x @ Wq + bq) * scale == x @ (scale*Wq) + scale*bq
    w_qkv = jnp.concatenate([w_qkv[:, :d] * scale, w_qkv[:, d:]], axis=1)
    b_qkv = jnp.concatenate([b_qkv[:d] * scale, b_qkv[d:]], axis=0)

    kernel = functools.partial(_attention_kernel, heads=heads)
    return pl.pallas_call(
        kernel,
        out_shape=jax.ShapeDtypeStruct((b, n, d), x.dtype),
        grid_spec=pltpu.PrefetchScalarGridSpec(
            num_scalar_prefetch=0,
            grid=(b,),
            in_specs=[
                # x: one batch element per grid step (leading dim squeezed).
                pl.BlockSpec((None, n, d), lambda i: (i, 0, 0)),
                # Weights / biases: constant block -> stay VMEM-resident.
                pl.BlockSpec((d, 3 * d), lambda i: (0, 0)),
                pl.BlockSpec((1, 3 * d), lambda i: (0, 0)),
                pl.BlockSpec((d, d), lambda i: (0, 0)),
                pl.BlockSpec((1, d), lambda i: (0, 0)),
            ],
            out_specs=pl.BlockSpec((None, n, d), lambda i: (i, 0, 0)),
            scratch_shapes=[pltpu.VMEM((n, d), jnp.float32)],
        ),
        compiler_params=pltpu.CompilerParams(
            dimension_semantics=("parallel",),
        ),
    )(x, w_qkv, b_qkv.reshape(1, 3 * d), w_out, b_out.reshape(1, d))


class Attention:
    """JAX/Pallas equivalent of the HCTNet PyTorch Attention module (inference)."""

    def __init__(self, dim, heads=8, dropout=0.1, *, key=None, dtype=jnp.float32):
        if key is None:
            key = jax.random.PRNGKey(0)
        self.heads = heads
        self.scale = dim ** (-0.5)          # NB: module scales by full dim, not d_head
        self.dropout = dropout              # identity at inference time
        k1, k2, k3, k4 = jax.random.split(key, 4)
        bound = 1.0 / math.sqrt(dim)        # nn.Linear default init range
        # Weights stored as (in, out) so the kernel computes x @ W.
        self.w_qkv = jax.random.uniform(k1, (dim, 3 * dim), dtype, -bound, bound)
        self.b_qkv = jax.random.uniform(k2, (3 * dim,), dtype, -bound, bound)
        self.w_out = jax.random.uniform(k3, (dim, dim), dtype, -bound, bound)
        self.b_out = jax.random.uniform(k4, (dim,), dtype, -bound, bound)

    def __call__(self, x, mask=None):
        # TODO(synk): optional attention-mask path (HCTNet calls with mask=None).
        assert mask is None, "mask path not implemented in the Pallas kernel"
        out = pallas_attention(x, self.w_qkv, self.b_qkv, self.w_out, self.b_out,
                               heads=self.heads, scale=self.scale)
        # TODO(synk): training-mode dropout (pltpu.prng_*); inference = identity.
        return out


def _ref_attention(x, w_qkv, b_qkv, w_out, b_out, heads, scale):
    """Pure-JAX reference mirroring the PyTorch forward (mask=None, eval)."""
    b, n, dim = x.shape
    dh = dim // heads
    qkv = x @ w_qkv + b_qkv
    q, k, v = jnp.split(qkv, 3, axis=-1)

    def to_heads(t):
        return t.reshape(b, n, heads, dh).transpose(0, 2, 1, 3)

    q, k, v = map(to_heads, (q, k, v))
    dots = jnp.einsum('bhid,bhjd->bhij', q, k) * scale
    attn = jax.nn.softmax(dots, axis=-1)
    o = jnp.einsum('bhij,bhjd->bhid', attn, v)
    o = o.transpose(0, 2, 1, 3).reshape(b, n, dim)
    return o @ w_out + b_out


if __name__ == "__main__":
    key = jax.random.PRNGKey(0)
    B, N, D, H = 2, 8, 32, 8   # (batch, seq, dim), heads -> d_head = 4
    kx, kp = jax.random.split(key)
    x = jax.random.normal(kx, (B, N, D), dtype=jnp.float32)

    module = Attention(D, heads=H, key=kp)
    out = jax.block_until_ready(module(x))
    assert out.shape == (B, N, D)

    ref = _ref_attention(x, module.w_qkv, module.b_qkv, module.w_out,
                         module.b_out, H, module.scale)
    # Relaxed tolerance: TPU matmuls (kernel MXU vs XLA reference) plus the
    # approximate-reciprocal softmax may differ slightly from the XLA path.
    assert jnp.allclose(out, ref, atol=2e-2, rtol=2e-2), (
        f"max abs err {float(jnp.max(jnp.abs(out - ref)))}")
    print("KERNEL_OK")
</pallas_src>

<mosaic_0001>
module attributes {stable_mosaic.version = 11 : i64} {
  func.func @_attention_kernel(%arg0: i32, %arg1: memref<1x8x32xf32, #tpu.memory_space<vmem>>, %arg2: memref<32x96xf32, #tpu.memory_space<vmem>>, %arg3: memref<1x96xf32, #tpu.memory_space<vmem>>, %arg4: memref<32x32xf32, #tpu.memory_space<vmem>>, %arg5: memref<1x32xf32, #tpu.memory_space<vmem>>, %arg6: memref<1x8x32xf32, #tpu.memory_space<vmem>>, %arg7: memref<8x32xf32, #tpu.memory_space<vmem>>) attributes {dimension_semantics = [#tpu.dimension_semantics<parallel>], iteration_bounds = array<i64: 2>, scalar_prefetch = 0 : i64, scratch_operands = 1 : i64, tpu.core_type = #tpu.core_type<tc>, window_params = [{transform_indices = @transform_0, window_bounds = array<i64: 1, 8, 32>}, {pipeline_mode = #tpu.pipeline_mode<synchronous>, transform_indices = @transform_1, window_bounds = array<i64: 32, 96>}, {pipeline_mode = #tpu.pipeline_mode<synchronous>, transform_indices = @transform_2, window_bounds = array<i64: 1, 96>}, {pipeline_mode = #tpu.pipeline_mode<synchronous>, transform_indices = @transform_3, window_bounds = array<i64: 32, 32>}, {pipeline_mode = #tpu.pipeline_mode<synchronous>, transform_indices = @transform_4, window_bounds = array<i64: 1, 32>}, {transform_indices = @transform_5, window_bounds = array<i64: 1, 8, 32>}]} {
    %c0 = arith.constant 0 : index
    %c0_0 = arith.constant 0 : index
    %c0_1 = arith.constant 0 : index
    %0 = vector.load %arg1[%c0, %c0_0, %c0_1] : memref<1x8x32xf32, #tpu.memory_space<vmem>>, vector<1x8x32xf32>
    %1 = vector.shape_cast %0 : vector<1x8x32xf32> to vector<8x32xf32>
    %c0_2 = arith.constant 0 : index
    %c0_3 = arith.constant 0 : index
    %2 = vector.load %arg2[%c0_2, %c0_3] : memref<32x96xf32, #tpu.memory_space<vmem>>, vector<32x96xf32>
    %c0_4 = arith.constant 0 : index
    %c0_5 = arith.constant 0 : index
    %3 = vector.load %arg3[%c0_4, %c0_5] : memref<1x96xf32, #tpu.memory_space<vmem>>, vector<1x96xf32>
    %cst = arith.constant dense<0.000000e+00> : vector<8x96xf32>
    %4 = tpu.matmul %1, %2, %cst {dimension_numbers = #tpu.dot_dimension_numbers<[1], [0], [0], [1], [0, 0, 1, 1], [], []>} : vector<8x32xf32>, vector<32x96xf32>, vector<8x96xf32> -> vector<8x96xf32>
    %5 = vector.broadcast %3 : vector<1x96xf32> to vector<8x96xf32>
    %6 = arith.addf %4, %5 : vector<8x96xf32>
    %7 = vector.extract_strided_slice %6 {offsets = [0, 0], sizes = [8, 4], strides = [1, 1]} : vector<8x96xf32> to vector<8x4xf32>
    %8 = vector.extract_strided_slice %6 {offsets = [0, 32], sizes = [8, 4], strides = [1, 1]} : vector<8x96xf32> to vector<8x4xf32>
    %9 = vector.extract_strided_slice %6 {offsets = [0, 64], sizes = [8, 4], strides = [1, 1]} : vector<8x96xf32> to vector<8x4xf32>
    "tpu.trace_start"() <{level = 10 : i32, message = "id,jd->ij"}> : () -> ()
    %cst_6 = arith.constant dense<0.000000e+00> : vector<8x8xf32>
    %10 = tpu.matmul %7, %8, %cst_6 {dimension_numbers = #tpu.dot_dimension_numbers<[1], [1], [0], [0], [0, 0, 1, 0], [], []>} : vector<8x4xf32>, vector<8x4xf32>, vector<8x8xf32> -> vector<8x8xf32>
    "tpu.trace_stop"() : () -> ()
    %cst_7 = arith.constant dense<0xFF800000> : vector<8xf32>
    %11 = vector.multi_reduction <maximumf>, %10, %cst_7 [1] : vector<8x8xf32> to vector<8xf32>
    %12 = vector.shape_cast %11 : vector<8xf32> to vector<8x1xf32>
    %13 = vector.broadcast %12 : vector<8x1xf32> to vector<8x8xf32>
    %14 = arith.subf %10, %13 : vector<8x8xf32>
    %15 = math.exp %14 : vector<8x8xf32>
    %cst_8 = arith.constant dense<0.000000e+00> : vector<8xf32>
    %16 = vector.multi_reduction <add>, %15, %cst_8 [1] : vector<8x8xf32> to vector<8xf32>
    %17 = vector.shape_cast %16 : vector<8xf32> to vector<8x1xf32>
    %18 = tpu.reciprocal %17 {approx = true} : vector<8x1xf32> -> vector<8x1xf32>
    %19 = vector.broadcast %18 : vector<8x1xf32> to vector<8x8xf32>
    %20 = arith.mulf %15, %19 : vector<8x8xf32>
    %cst_9 = arith.constant dense<0.000000e+00> : vector<8x4xf32>
    %21 = tpu.matmul %20, %9, %cst_9 {dimension_numbers = #tpu.dot_dimension_numbers<[1], [0], [0], [1], [0, 0, 1, 1], [], []>} : vector<8x8xf32>, vector<8x4xf32>, vector<8x4xf32> -> vector<8x4xf32>
    %c0_10 = arith.constant 0 : index
    %c0_11 = arith.constant 0 : index
    %22 = vector.load %arg7[%c0_10, %c0_11] : memref<8x32xf32, #tpu.memory_space<vmem>>, vector<8x4xf32>
    tpu.vector_store %arg7[%c0_10, %c0_11], %21 {strides = array<i32>} : memref<8x32xf32, #tpu.memory_space<vmem>>, vector<8x4xf32>,
    %23 = vector.extract_strided_slice %6 {offsets = [0, 4], sizes = [8, 4], strides = [1, 1]} : vector<8x96xf32> to vector<8x4xf32>
    %24 = vector.extract_strided_slice %6 {offsets = [0, 36], sizes = [8, 4], strides = [1, 1]} : vector<8x96xf32> to vector<8x4xf32>
    %25 = vector.extract_strided_slice %6 {offsets = [0, 68], sizes = [8, 4], strides = [1, 1]} : vector<8x96xf32> to vector<8x4xf32>
    "tpu.trace_start"() <{level = 10 : i32, message = "id,jd->ij"}> : () -> ()
    %cst_12 = arith.constant dense<0.000000e+00> : vector<8x8xf32>
    %26 = tpu.matmul %23, %24, %cst_12 {dimension_numbers = #tpu.dot_dimension_numbers<[1], [1], [0], [0], [0, 0, 1, 0], [], []>} : vector<8x4xf32>, vector<8x4xf32>, vector<8x8xf32> -> vector<8x8xf32>
    "tpu.trace_stop"() : () -> ()
    %cst_13 = arith.constant dense<0xFF800000> : vector<8xf32>
    %27 = vector.multi_reduction <maximumf>, %26, %cst_13 [1] : vector<8x8xf32> to vector<8xf32>
    %28 = vector.shape_cast %27 : vector<8xf32> to vector<8x1xf32>
    %29 = vector.broadcast %28 : vector<8x1xf32> to vector<8x8xf32>
    %30 = arith.subf %26, %29 : vector<8x8xf32>
    %31 = math.exp %30 : vector<8x8xf32>
    %cst_14 = arith.constant dense<0.000000e+00> : vector<8xf32>
    %32 = vector.multi_reduction <add>, %31, %cst_14 [1] : vector<8x8xf32> to vector<8xf32>
    %33 = vector.shape_cast %32 : vector<8xf32> to vector<8x1xf32>
    %34 = tpu.reciprocal %33 {approx = true} : vector<8x1xf32> -> vector<8x1xf32>
    %35 = vector.broadcast %34 : vector<8x1xf32> to vector<8x8xf32>
    %36 = arith.mulf %31, %35 : vector<8x8xf32>
    %cst_15 = arith.constant dense<0.000000e+00> : vector<8x4xf32>
    %37 = tpu.matmul %36, %25, %cst_15 {dimension_numbers = #tpu.dot_dimension_numbers<[1], [0], [0], [1], [0, 0, 1, 1], [], []>} : vector<8x8xf32>, vector<8x4xf32>, vector<8x4xf32> -> vector<8x4xf32>
    %c0_16 = arith.constant 0 : index
    %c4 = arith.constant 4 : index
    %38 = vector.load %arg7[%c0_16, %c4] : memref<8x32xf32, #tpu.memory_space<vmem>>, vector<8x4xf32>
    tpu.vector_store %arg7[%c0_16, %c4], %37 {strides = array<i32>} : memref<8x32xf32, #tpu.memory_space<vmem>>, vector<8x4xf32>,
    %39 = vector.extract_strided_slice %6 {offsets = [0, 8], sizes = [8, 4], strides = [1, 1]} : vector<8x96xf32> to vector<8x4xf32>
    %40 = vector.extract_strided_slice %6 {offsets = [0, 40], sizes = [8, 4], strides = [1, 1]} : vector<8x96xf32> to vector<8x4xf32>
    %41 = vector.extract_strided_slice %6 {offsets = [0, 72], sizes = [8, 4], strides = [1, 1]} : vector<8x96xf32> to vector<8x4xf32>
    "tpu.trace_start"() <{level = 10 : i32, message = "id,jd->ij"}> : () -> ()
    %cst_17 = arith.constant dense<0.000000e+00> : vector<8x8xf32>
    %42 = tpu.matmul %39, %40, %cst_17 {dimension_numbers = #tpu.dot_dimension_numbers<[1], [1], [0], [0], [0, 0, 1, 0], [], []>} : vector<8x4xf32>, vector<8x4xf32>, vector<8x8xf32> -> vector<8x8xf32>
    "tpu.trace_stop"() : () -> ()
    %cst_18 = arith.constant dense<0xFF800000> : vector<8xf32>
    %43 = vector.multi_reduction <maximumf>, %42, %cst_18 [1] : vector<8x8xf32> to vector<8xf32>
    %44 = vector.shape_cast %43 : vector<8xf32> to vector<8x1xf32>
    %45 = vector.broadcast %44 : vector<8x1xf32> to vector<8x8xf32>
    %46 = arith.subf %42, %45 : vector<8x8xf32>
    %47 = math.exp %46 : vector<8x8xf32>
    %cst_19 = arith.constant dense<0.000000e+00> : vector<8xf32>
    %48 = vector.multi_reduction <add>, %47, %cst_19 [1] : vector<8x8xf32> to vector<8xf32>
    %49 = vector.shape_cast %48 : vector<8xf32> to vector<8x1xf32>
    %50 = tpu.reciprocal %49 {approx = true} : vector<8x1xf32> -> vector<8x1xf32>
    %51 = vector.broadcast %50 : vector<8x1xf32> to vector<8x8xf32>
    %52 = arith.mulf %47, %51 : vector<8x8xf32>
    %cst_20 = arith.constant dense<0.000000e+00> : vector<8x4xf32>
    %53 = tpu.matmul %52, %41, %cst_20 {dimension_numbers = #tpu.dot_dimension_numbers<[1], [0], [0], [1], [0, 0, 1, 1], [], []>} : vector<8x8xf32>, vector<8x4xf32>, vector<8x4xf32> -> vector<8x4xf32>
    %c0_21 = arith.constant 0 : index
    %c8 = arith.constant 8 : index
    %54 = vector.load %arg7[%c0_21, %c8] : memref<8x32xf32, #tpu.memory_space<vmem>>, vector<8x4xf32>
    tpu.vector_store %arg7[%c0_21, %c8], %53 {strides = array<i32>} : memref<8x32xf32, #tpu.memory_space<vmem>>, vector<8x4xf32>,
    %55 = vector.extract_strided_slice %6 {offsets = [0, 12], sizes = [8, 4], strides = [1, 1]} : vector<8x96xf32> to vector<8x4xf32>
    %56 = vector.extract_strided_slice %6 {offsets = [0, 44], sizes = [8, 4], strides = [1, 1]} : vector<8x96xf32> to vector<8x4xf32>
    %57 = vector.extract_strided_slice %6 {offsets = [0, 76], sizes = [8, 4], strides = [1, 1]} : vector<8x96xf32> to vector<8x4xf32>
    "tpu.trace_start"() <{level = 10 : i32, message = "id,jd->ij"}> : () -> ()
    %cst_22 = arith.constant dense<0.000000e+00> : vector<8x8xf32>
    %58 = tpu.matmul %55, %56, %cst_22 {dimension_numbers = #tpu.dot_dimension_numbers<[1], [1], [0], [0], [0, 0, 1, 0], [], []>} : vector<8x4xf32>, vector<8x4xf32>, vector<8x8xf32> -> vector<8x8xf32>
    "tpu.trace_stop"() : () -> ()
    %cst_23 = arith.constant dense<0xFF800000> : vector<8xf32>
    %59 = vector.multi_reduction <maximumf>, %58, %cst_23 [1] : vector<8x8xf32> to vector<8xf32>
    %60 = vector.shape_cast %59 : vector<8xf32> to vector<8x1xf32>
    %61 = vector.broadcast %60 : vector<8x1xf32> to vector<8x8xf32>
    %62 = arith.subf %58, %61 : vector<8x8xf32>
    %63 = math.exp %62 : vector<8x8xf32>
    %cst_24 = arith.constant dense<0.000000e+00> : vector<8xf32>
    %64 = vector.multi_reduction <add>, %63, %cst_24 [1] : vector<8x8xf32> to vector<8xf32>
    %65 = vector.shape_cast %64 : vector<8xf32> to vector<8x1xf32>
    %66 = tpu.reciprocal %65 {approx = true} : vector<8x1xf32> -> vector<8x1xf32>
    %67 = vector.broadcast %66 : vector<8x1xf32> to vector<8x8xf32>
    %68 = arith.mulf %63, %67 : vector<8x8xf32>
    %cst_25 = arith.constant dense<0.000000e+00> : vector<8x4xf32>
    %69 = tpu.matmul %68, %57, %cst_25 {dimension_numbers = #tpu.dot_dimension_numbers<[1], [0], [0], [1], [0, 0, 1, 1], [], []>} : vector<8x8xf32>, vector<8x4xf32>, vector<8x4xf32> -> vector<8x4xf32>
    %c0_26 = arith.constant 0 : index
    %c12 = arith.constant 12 : index
    %70 = vector.load %arg7[%c0_26, %c12] : memref<8x32xf32, #tpu.memory_space<vmem>>, vector<8x4xf32>
    tpu.vector_store %arg7[%c0_26, %c12], %69 {strides = array<i32>} : memref<8x32xf32, #tpu.memory_space<vmem>>, vector<8x4xf32>,
    %71 = vector.extract_strided_slice %6 {offsets = [0, 16], sizes = [8, 4], strides = [1, 1]} : vector<8x96xf32> to vector<8x4xf32>
    %72 = vector.extract_strided_slice %6 {offsets = [0, 48], sizes = [8, 4], strides = [1, 1]} : vector<8x96xf32> to vector<8x4xf32>
    %73 = vector.extract_strided_slice %6 {offsets = [0, 80], sizes = [8, 4], strides = [1, 1]} : vector<8x96xf32> to vector<8x4xf32>
    "tpu.trace_start"() <{level = 10 : i32, message = "id,jd->ij"}> : () -> ()
    %cst_27 = arith.constant dense<0.000000e+00> : vector<8x8xf32>
    %74 = tpu.matmul %71, %72, %cst_27 {dimension_numbers = #tpu.dot_dimension_numbers<[1], [1], [0], [0], [0, 0, 1, 0], [], []>} : vector<8x4xf32>, vector<8x4xf32>, vector<8x8xf32> -> vector<8x8xf32>
    "tpu.trace_stop"() : () -> ()
    %cst_28 = arith.constant dense<0xFF800000> : vector<8xf32>
    %75 = vector.multi_reduction <maximumf>, %74, %cst_28 [1] : vector<8x8xf32> to vector<8xf32>
    %76 = vector.shape_cast %75 : vector<8xf32> to vector<8x1xf32>
    %77 = vector.broadcast %76 : vector<8x1xf32> to vector<8x8xf32>
    %78 = arith.subf %74, %77 : vector<8x8xf32>
    %79 = math.exp %78 : vector<8x8xf32>
    %cst_29 = arith.constant dense<0.000000e+00> : vector<8xf32>
    %80 = vector.multi_reduction <add>, %79, %cst_29 [1] : vector<8x8xf32> to vector<8xf32>
    %81 = vector.shape_cast %80 : vector<8xf32> to vector<8x1xf32>
    %82 = tpu.reciprocal %81 {approx = true} : vector<8x1xf32> -> vector<8x1xf32>
    %83 = vector.broadcast %82 : vector<8x1xf32> to vector<8x8xf32>
    %84 = arith.mulf %79, %83 : vector<8x8xf32>
    %cst_30 = arith.constant dense<0.000000e+00> : vector<8x4xf32>
    %85 = tpu.matmul %84, %73, %cst_30 {dimension_numbers = #tpu.dot_dimension_numbers<[1], [0], [0], [1], [0, 0, 1, 1], [], []>} : vector<8x8xf32>, vector<8x4xf32>, vector<8x4xf32> -> vector<8x4xf32>
    %c0_31 = arith.constant 0 : index
    %c16 = arith.constant 16 : index
    %86 = vector.load %arg7[%c0_31, %c16] : memref<8x32xf32, #tpu.memory_space<vmem>>, vector<8x4xf32>
    tpu.vector_store %arg7[%c0_31, %c16], %85 {strides = array<i32>} : memref<8x32xf32, #tpu.memory_space<vmem>>, vector<8x4xf32>,
    %87 = vector.extract_strided_slice %6 {offsets = [0, 20], sizes = [8, 4], strides = [1, 1]} : vector<8x96xf32> to vector<8x4xf32>
    %88 = vector.extract_strided_slice %6 {offsets = [0, 52], sizes = [8, 4], strides = [1, 1]} : vector<8x96xf32> to vector<8x4xf32>
    %89 = vector.extract_strided_slice %6 {offsets = [0, 84], sizes = [8, 4], strides = [1, 1]} : vector<8x96xf32> to vector<8x4xf32>
    "tpu.trace_start"() <{level = 10 : i32, message = "id,jd->ij"}> : () -> ()
    %cst_32 = arith.constant dense<0.000000e+00> : vector<8x8xf32>
    %90 = tpu.matmul %87, %88, %cst_32 {dimension_numbers = #tpu.dot_dimension_numbers<[1], [1], [0], [0], [0, 0, 1, 0], [], []>} : vector<8x4xf32>, vector<8x4xf32>, vector<8x8xf32> -> vector<8x8xf32>
    "tpu.trace_stop"() : () -> ()
    %cst_33 = arith.constant dense<0xFF800000> : vector<8xf32>
    %91 = vector.multi_reduction <maximumf>, %90, %cst_33 [1] : vector<8x8xf32> to vector<8xf32>
    %92 = vector.shape_cast %91 : vector<8xf32> to vector<8x1xf32>
    %93 = vector.broadcast %92 : vector<8x1xf32> to vector<8x8xf32>
    %94 = arith.subf %90, %93 : vector<8x8xf32>
    %95 = math.exp %94 : vector<8x8xf32>
    %cst_34 = arith.constant dense<0.000000e+00> : vector<8xf32>
    %96 = vector.multi_reduction <add>, %95, %cst_34 [1] : vector<8x8xf32> to vector<8xf32>
    %97 = vector.shape_cast %96 : vector<8xf32> to vector<8x1xf32>
    %98 = tpu.reciprocal %97 {approx = true} : vector<8x1xf32> -> vector<8x1xf32>
    %99 = vector.broadcast %98 : vector<8x1xf32> to vector<8x8xf32>
    %100 = arith.mulf %95, %99 : vector<8x8xf32>
    %cst_35 = arith.constant dense<0.000000e+00> : vector<8x4xf32>
    %101 = tpu.matmul %100, %89, %cst_35 {dimension_numbers = #tpu.dot_dimension_numbers<[1], [0], [0], [1], [0, 0, 1, 1], [], []>} : vector<8x8xf32>, vector<8x4xf32>, vector<8x4xf32> -> vector<8x4xf32>
    %c0_36 = arith.constant 0 : index
    %c20 = arith.constant 20 : index
    %102 = vector.load %arg7[%c0_36, %c20] : memref<8x32xf32, #tpu.memory_space<vmem>>, vector<8x4xf32>
    tpu.vector_store %arg7[%c0_36, %c20], %101 {strides = array<i32>} : memref<8x32xf32, #tpu.memory_space<vmem>>, vector<8x4xf32>,
    %103 = vector.extract_strided_slice %6 {offsets = [0, 24], sizes = [8, 4], strides = [1, 1]} : vector<8x96xf32> to vector<8x4xf32>
    %104 = vector.extract_strided_slice %6 {offsets = [0, 56], sizes = [8, 4], strides = [1, 1]} : vector<8x96xf32> to vector<8x4xf32>
    %105 = vector.extract_strided_slice %6 {offsets = [0, 88], sizes = [8, 4], strides = [1, 1]} : vector<8x96xf32> to vector<8x4xf32>
    "tpu.trace_start"() <{level = 10 : i32, message = "id,jd->ij"}> : () -> ()
    %cst_37 = arith.constant dense<0.000000e+00> : vector<8x8xf32>
    %106 = tpu.matmul %103, %104, %cst_37 {dimension_numbers = #tpu.dot_dimension_numbers<[1], [1], [0], [0], [0, 0, 1, 0], [], []>} : vector<8x4xf32>, vector<8x4xf32>, vector<8x8xf32> -> vector<8x8xf32>
    "tpu.trace_stop"() : () -> ()
    %cst_38 = arith.constant dense<0xFF800000> : vector<8xf32>
    %107 = vector.multi_reduction <maximumf>, %106, %cst_38 [1] : vector<8x8xf32> to vector<8xf32>
    %108 = vector.shape_cast %107 : vector<8xf32> to vector<8x1xf32>
    %109 = vector.broadcast %108 : vector<8x1xf32> to vector<8x8xf32>
    %110 = arith.subf %106, %109 : vector<8x8xf32>
    %111 = math.exp %110 : vector<8x8xf32>
    %cst_39 = arith.constant dense<0.000000e+00> : vector<8xf32>
    %112 = vector.multi_reduction <add>, %111, %cst_39 [1] : vector<8x8xf32> to vector<8xf32>
    %113 = vector.shape_cast %112 : vector<8xf32> to vector<8x1xf32>
    %114 = tpu.reciprocal %113 {approx = true} : vector<8x1xf32> -> vector<8x1xf32>
    %115 = vector.broadcast %114 : vector<8x1xf32> to vector<8x8xf32>
    %116 = arith.mulf %111, %115 : vector<8x8xf32>
    %cst_40 = arith.constant dense<0.000000e+00> : vector<8x4xf32>
    %117 = tpu.matmul %116, %105, %cst_40 {dimension_numbers = #tpu.dot_dimension_numbers<[1], [0], [0], [1], [0, 0, 1, 1], [], []>} : vector<8x8xf32>, vector<8x4xf32>, vector<8x4xf32> -> vector<8x4xf32>
    %c0_41 = arith.constant 0 : index
    %c24 = arith.constant 24 : index
    %118 = vector.load %arg7[%c0_41, %c24] : memref<8x32xf32, #tpu.memory_space<vmem>>, vector<8x4xf32>
    tpu.vector_store %arg7[%c0_41, %c24], %117 {strides = array<i32>} : memref<8x32xf32, #tpu.memory_space<vmem>>, vector<8x4xf32>,
    %119 = vector.extract_strided_slice %6 {offsets = [0, 28], sizes = [8, 4], strides = [1, 1]} : vector<8x96xf32> to vector<8x4xf32>
    %120 = vector.extract_strided_slice %6 {offsets = [0, 60], sizes = [8, 4], strides = [1, 1]} : vector<8x96xf32> to vector<8x4xf32>
    %121 = vector.extract_strided_slice %6 {offsets = [0, 92], sizes = [8, 4], strides = [1, 1]} : vector<8x96xf32> to vector<8x4xf32>
    "tpu.trace_start"() <{level = 10 : i32, message = "id,jd->ij"}> : () -> ()
    %cst_42 = arith.constant dense<0.000000e+00> : vector<8x8xf32>
    %122 = tpu.matmul %119, %120, %cst_42 {dimension_numbers = #tpu.dot_dimension_numbers<[1], [1], [0], [0], [0, 0, 1, 0], [], []>} : vector<8x4xf32>, vector<8x4xf32>, vector<8x8xf32> -> vector<8x8xf32>
    "tpu.trace_stop"() : () -> ()
    %cst_43 = arith.constant dense<0xFF800000> : vector<8xf32>
    %123 = vector.multi_reduction <maximumf>, %122, %cst_43 [1] : vector<8x8xf32> to vector<8xf32>
    %124 = vector.shape_cast %123 : vector<8xf32> to vector<8x1xf32>
    %125 = vector.broadcast %124 : vector<8x1xf32> to vector<8x8xf32>
    %126 = arith.subf %122, %125 : vector<8x8xf32>
    %127 = math.exp %126 : vector<8x8xf32>
    %cst_44 = arith.constant dense<0.000000e+00> : vector<8xf32>
    %128 = vector.multi_reduction <add>, %127, %cst_44 [1] : vector<8x8xf32> to vector<8xf32>
    %129 = vector.shape_cast %128 : vector<8xf32> to vector<8x1xf32>
    %130 = tpu.reciprocal %129 {approx = true} : vector<8x1xf32> -> vector<8x1xf32>
    %131 = vector.broadcast %130 : vector<8x1xf32> to vector<8x8xf32>
    %132 = arith.mulf %127, %131 : vector<8x8xf32>
    %cst_45 = arith.constant dense<0.000000e+00> : vector<8x4xf32>
    %133 = tpu.matmul %132, %121, %cst_45 {dimension_numbers = #tpu.dot_dimension_numbers<[1], [0], [0], [1], [0, 0, 1, 1], [], []>} : vector<8x8xf32>, vector<8x4xf32>, vector<8x4xf32> -> vector<8x4xf32>
    %c0_46 = arith.constant 0 : index
    %c28 = arith.constant 28 : index
    %134 = vector.load %arg7[%c0_46, %c28] : memref<8x32xf32, #tpu.memory_space<vmem>>, vector<8x4xf32>
    tpu.vector_store %arg7[%c0_46, %c28], %133 {strides = array<i32>} : memref<8x32xf32, #tpu.memory_space<vmem>>, vector<8x4xf32>,
    %c0_47 = arith.constant 0 : index
    %c0_48 = arith.constant 0 : index
    %135 = vector.load %arg4[%c0_47, %c0_48] : memref<32x32xf32, #tpu.memory_space<vmem>>, vector<32x32xf32>
    %c0_49 = arith.constant 0 : index
    %c0_50 = arith.constant 0 : index
    %136 = vector.load %arg5[%c0_49, %c0_50] : memref<1x32xf32, #tpu.memory_space<vmem>>, vector<1x32xf32>
    %c0_51 = arith.constant 0 : index
    %c0_52 = arith.constant 0 : index
    %137 = vector.load %arg7[%c0_51, %c0_52] : memref<8x32xf32, #tpu.memory_space<vmem>>, vector<8x32xf32>
    %cst_53 = arith.constant dense<0.000000e+00> : vector<8x32xf32>
    %138 = tpu.matmul %137, %135, %cst_53 {dimension_numbers = #tpu.dot_dimension_numbers<[1], [0], [0], [1], [0, 0, 1, 1], [], []>} : vector<8x32xf32>, vector<32x32xf32>, vector<8x32xf32> -> vector<8x32xf32>
    %139 = vector.broadcast %136 : vector<1x32xf32> to vector<8x32xf32>
    %140 = arith.addf %138, %139 : vector<8x32xf32>
    %c0_54 = arith.constant 0 : index
    %c0_55 = arith.constant 0 : index
    %c0_56 = arith.constant 0 : index
    %141 = vector.load %arg6[%c0_54, %c0_55, %c0_56] : memref<1x8x32xf32, #tpu.memory_space<vmem>>, vector<1x8x32xf32>
    %142 = vector.shape_cast %141 : vector<1x8x32xf32> to vector<8x32xf32>
    %143 = vector.shape_cast %140 : vector<8x32xf32> to vector<1x8x32xf32>
    tpu.vector_store %arg6[%c0_54, %c0_55, %c0_56], %143 {strides = array<i32>} : memref<1x8x32xf32, #tpu.memory_space<vmem>>, vector<1x8x32xf32>,
    return
  }
  func.func @transform_0(%arg0: i32) -> (i32, i32, i32) {
    %c0_i32 = arith.constant 0 : i32
    %c0_i32_0 = arith.constant 0 : i32
    %c0_i32_1 = arith.constant 0 : i32
    return %arg0, %c0_i32, %c0_i32_0 : i32, i32, i32
  }
  func.func @transform_1(%arg0: i32) -> (i32, i32) {
    %c0_i32 = arith.constant 0 : i32
    %c0_i32_0 = arith.constant 0 : i32
    %c0_i32_1 = arith.constant 0 : i32
    return %c0_i32, %c0_i32_0 : i32, i32
  }
  func.func @transform_2(%arg0: i32) -> (i32, i32) {
    %c0_i32 = arith.constant 0 : i32
    %c0_i32_0 = arith.constant 0 : i32
    %c0_i32_1 = arith.constant 0 : i32
    return %c0_i32, %c0_i32_0 : i32, i32
  }
  func.func @transform_3(%arg0: i32) -> (i32, i32) {
    %c0_i32 = arith.constant 0 : i32
    %c0_i32_0 = arith.constant 0 : i32
    %c0_i32_1 = arith.constant 0 : i32
    return %c0_i32, %c0_i32_0 : i32, i32
  }
  func.func @transform_4(%arg0: i32) -> (i32, i32) {
    %c0_i32 = arith.constant 0 : i32
    %c0_i32_0 = arith.constant 0 : i32
    %c0_i32_1 = arith.constant 0 : i32
    return %c0_i32, %c0_i32_0 : i32, i32
  }
  func.func @transform_5(%arg0: i32) -> (i32, i32, i32) {
    %c0_i32 = arith.constant 0 : i32
    %c0_i32_0 = arith.constant 0 : i32
    %c0_i32_1 = arith.constant 0 : i32
    return %arg0, %c0_i32, %c0_i32_0 : i32, i32, i32
  }
}

</mosaic_0001>

<bundles_post_ra>
// kernel: tpu_custom_call.1
= control target key start
LH: loop header
LB: loop body
LE: loop exit
PB: predicated region body
PF: predicated region fallthrough
CT: control target
= control target key end

     0   :  { %10 = vsyncpa [#allocation4], 0  ;;  %s2868_s0 = inlined_call_operand.hbm [shape: f32[2,8,32], index: 0, kind: input, shape index: {}]   ;;  %s2869_s1 = inlined_call_operand.hbm [shape: f32[32,96], index: 1, kind: input, shape index: {}]   ;;  %s2870_s2 = inlined_call_operand.vmem [shape: f32[1,96], index: 2, kind: input, shape index: {}]   ;;  %s2871_s3 = inlined_call_operand.hbm [shape: f32[32,32], index: 3, kind: input, shape index: {}]   ;;  %s2872_s4 = inlined_call_operand.vmem [shape: f32[1,32], index: 4, kind: input, shape index: {}]   ;;  %s2873_s5 = inlined_call_operand.hbm [shape: f32[2,8,32], index: 5, kind: output, shape index: {}]  }
   0x1   :  { %12 = vsyncpa [#allocation4 + $0x1], 0 }
   0x2   :  { %13 = vsyncpa [#allocation7], 0 }
   0x3   :  { %14 = vsyncpa [#allocation5], 0 }
   0x4   :  { %16 = vsyncpa [#allocation5 + $0x1], 0  ;;  %s2469_s18 = smov 0   ;;  %s2471_s19 = smov 0  }
   0x5   :  { %s2473_s20 = smov 0   ;;  %s2475_s21 = smov 0  }
   0x6 LB: > { %s2490_s22 = sadd.s32 4294967295, %s2398_s21   ;;  %s1908_s23 = sadd.s32 4294967294, %s2398_s21   ;;  %s2398_s21 = sphi %s2475_s21, %s2893_s21   ;;  %s2394_s20 = sphi %s2473_s20, %s2892_s20   ;;  %s2390_s19 = sphi %s2471_s19, %s2891_s19   ;;  %s2386_s18 = sphi %s2469_s18, %s2890_s18  }
   0x7   : > { %p42_p0 = scmp.ne.s32.totalorder %s2390_s19, %s2386_s18  ;;  %p2874_p1 = scmp.eq.s32.totalorder %s2490_s22, 0 }
   0x8   : > { %p156_p3 = scmp.eq.s32.totalorder %s1908_s23, 1  ;;  %p1909_p5 = scmp.ge.s32.totalorder %s2398_s21, 1 }
   0x9   : > { %p2499_p4 = por %p2874_p1, %p42_p0  ;;  %p163_p7 = scmp.lt.s32.totalorder %s2398_s21, 3 }
   0xa   : > { %p2504_p6 = por %p156_p3, %p42_p0  ;;  %s2400_s27 = smov [#allocation6]  }
   0xb   : > { %s2877_s24 = scalar_select %p2499_p4, 1, 0 }
   0xc   : > { %s2878_s25 = scalar_select %p2504_p6, 1, 0 }
   0xd   : > { %p2509_p8 = pnand %p1909_p5, %p163_p7  ;;  %s175_s28 = sshll.u32 %s2400_s27, 4  ;;  %s2513_s28 = int_to_ptr.vmem [resolvable:$true] %s175_s28 }
   0xe   : > { %s2401_s30 = smov [#allocation8]   ;;  %s2242_s9 = scalar_lea.hbm %s2869_s1, 512 }
   0xf   : > { %p2120_p9 = pneg %p2509_p8  ;;  %s191_s6 = sshll.u32 %s2401_s30, 4  ;;  %s2524_s6 = int_to_ptr.vmem [resolvable:$true] %s191_s6 }
  0x10   : > { %p2243_p12 = scmp.ne.s32.totalorder %s2869_s1, %s2242_s9  ;;  %p2249_p5 = scmp.lt.u32.totalorder %s2242_s9, %s2869_s1 }
  0x11   : > { %p2520_p11 = pnand %p2120_p9, %p2874_p1 }
  0x13   : > { %p2244_p13 = pneg %p2520_p11 }
  0x15   : > { %p2245_p0 = pnand %p2244_p13, %p2243_p12 }
  0x17   : > { %p2246_p3 = pneg %p2245_p0 }
  0x19   : > { %p2251_p7 = pnand %p2249_p5, %p2246_p3 }
  0x1b   : > { %2254 = shalt.err (!%p2251_p7)
}
  0x1c   : > { %s2255_s14 = scalar_lea.vmem %s2513_s28, 512  ;;  %p2263_p2 = scmp.lt.s32.totalorder %s2513_s28, %s2513_s28 }
  0x1d   : > { %p2256_p9 = scmp.ne.s32.totalorder %s2513_s28, %s2255_s14  ;;  %p2264_p12 = scmp.lt.s32.totalorder %s2255_s14, %s2255_s14 }
  0x1f   : > { %p2258_p10 = pnand %p2256_p9, %p2244_p13  ;;  %p2265_p0 = por %p2264_p12, %p2263_p2 }
  0x21   : > { %p2259_p1 = pneg %p2258_p10 }
  0x23   : > { %p2266_p6 = pnand %p2265_p0, %p2259_p1 }
  0x25   : > { %2269 = shalt.err (!%p2266_p6)
}
  0x26   : > { %s2402_s15 = smov 128   ;;  %s2403_s16 = smov 8  }
  0x27   : > { %2123 = dma.hbm_to_vmem [thread:$0]  (!%p2520_p11), %s2869_s1, 512, %s2513_s28, [#allocation7], %s2402_s15, %s2402_s15, %s2403_s16  }
  0x28   : > { %s2270_s7 = scalar_lea.hbm %s2871_s3, 512 }
  0x29   : > { %p2271_p2 = scmp.ne.s32.totalorder %s2871_s3, %s2270_s7  ;;  %p2277_p10 = scmp.lt.u32.totalorder %s2270_s7, %s2871_s3 }
  0x2b   : > { %p2273_p1 = pnand %p2271_p2, %p2244_p13 }
  0x2d   : > { %p2274_p6 = pneg %p2273_p1 }
  0x2f   : > { %p2279_p3 = pnand %p2277_p10, %p2274_p6 }
  0x31   : > { %2282 = shalt.err (!%p2279_p3)
}
  0x32   : > { %s2283_s28 = scalar_lea.vmem %s2524_s6, 512  ;;  %p2291_p12 = scmp.lt.s32.totalorder %s2524_s6, %s2524_s6 }
  0x33   : > { %p2284_p5 = scmp.ne.s32.totalorder %s2524_s6, %s2283_s28  ;;  %p2292_p0 = scmp.lt.s32.totalorder %s2283_s28, %s2283_s28 }
  0x35   : > { %p2286_p7 = pnand %p2284_p5, %p2244_p13  ;;  %p2293_p2 = por %p2292_p0, %p2291_p12 }
  0x37   : > { %p2287_p9 = pneg %p2286_p7 }
  0x39   : > { %p2294_p1 = pnand %p2293_p2, %p2287_p9 }
  0x3b   : > { %2297 = shalt.err (!%p2294_p1)
}
  0x3c   : > { %2126 = dma.hbm_to_vmem [thread:$0]  (!%p2520_p11), %s2871_s3, 512, %s2524_s6, [#allocation7], %s2402_s15, %s2402_s15, %s2403_s16  }
  0x3d   : > { %s2579_s14 = sadd.s32 1, %s2398_s21   ;;  %s29_s29 = sadd.s32 1, %s2394_s20 }
  0x3e   : > { %s26_s17 = ssub.s32 %s2398_s21, %s2579_s14  ;;  %p36_p13 = scmp.ne.s32.totalorder %s2394_s20, %s2390_s19 }
  0x3f   : > { %p27_p6 = scmp.eq.s32.totalorder %s26_s17, 0  ;;  %p37_p10 = scmp.eq.s32.totalorder %s2398_s21, 0 }
  0x40   : > { %p2881_p3 = scmp.eq.s32.totalorder %s2490_s22, 1  ;;  %p2137_p7 = scmp.lt.s32.totalorder %s2398_s21, 2 }
  0x41   : > { %s2595_s27 = scalar_select %p27_p6, %s2394_s20, %s29_s29  }
  0x42   : > { %p2589_p5 = por %p2881_p3, %p36_p13  ;;  %p38_p9 = por %p37_p10, %p36_p13 }
  0x43   : > { %s208_s30 = sand.u32 1, %s2394_s20   ;;  %s1914_s6 = sshll.u32 %s2398_s21, 7 }
  0x44   : > { %s2882_s23 = scalar_select %p2589_p5, 1, 0 }
  0x45   : > { %s1913_s7 = sshll.u32 %s208_s30, 3  ;;  %s2602_s8 = scalar_lea.hbm %s2868_s0, %s1914_s6 }
  0x46   : > { %s212_s9 = scalar_lea.vmem [#allocation3], %s1913_s7  ;;  %p2606_p11 = pnand %p2137_p7, %p38_p9 }
  0x47   : > { %s219_s10 = sshll.u32 %s212_s9, 4  ;;  %s209_s28 = scalar_lea.sflag [#allocation4], %s208_s30  ;;  %s2604_s10 = int_to_ptr.vmem [resolvable:$true] %s219_s10 }
  0x48   : > { %s2298_s12 = scalar_lea.hbm %s2602_s8, 128  ;;  %p2300_p0 = pneg %p2606_p11 }
  0x49   : > { %p2299_p12 = scmp.ne.s32.totalorder %s2602_s8, %s2298_s12  ;;  %s2303_s17 = scalar_lea.hbm %s2868_s0, 256 }
  0x4a   : > { %p2304_p13 = scmp.lt.u32.totalorder %s2602_s8, %s2868_s0  ;;  %p2305_p6 = scmp.lt.u32.totalorder %s2303_s17, %s2298_s12 }
  0x4b   : > { %p2301_p2 = pnand %p2300_p0, %p2299_p12  ;;  %p2307_p3 = scmp.lt.u32.totalorder %s2298_s12, %s2602_s8 }
  0x4c   : > { %p2306_p10 = por %p2305_p6, %p2304_p13 }
  0x4d   : > { %p2302_p1 = pneg %p2301_p2 }
  0x4e   : > { %p2308_p7 = por %p2307_p3, %p2306_p10 }
  0x50   : > { %p2309_p9 = pnand %p2308_p7, %p2302_p1 }
  0x52   : > { %2312 = shalt.err (!%p2309_p9)
}
  0x53   : > { %s2313_s30 = scalar_lea.vmem %s2604_s10, 128  ;;  %s2404_s15 = smov [#allocation3]  }
  0x54   : > { %p2314_p12 = scmp.ne.s32.totalorder %s2604_s10, %s2313_s30  ;;  %s2318_s16 = sshll.u32 %s2404_s15, 4  ;;  %s2319_s16 = int_to_ptr.vmem [resolvable:$false] %s2318_s16 }
  0x55   : > { %s2320_s9 = scalar_lea.vmem %s2319_s16, 256  ;;  %p2321_p4 = scmp.lt.s32.totalorder %s2604_s10, %s2319_s16 }
  0x56   : > { %p2316_p2 = pnand %p2314_p12, %p2300_p0  ;;  %p2322_p13 = scmp.lt.s32.totalorder %s2320_s9, %s2313_s30 }
  0x58   : > { %p2317_p5 = pneg %p2316_p2  ;;  %p2323_p6 = por %p2322_p13, %p2321_p4 }
  0x5a   : > { %p2324_p10 = pnand %p2323_p6, %p2317_p5 }
  0x5c   : > { %2327 = shalt.err (!%p2324_p10)
}
  0x5d   : > { %2130 = dma.hbm_to_vmem [thread:$0]  (!%p2606_p11), %s2602_s8, 128, %s2604_s10, %s209_s28  }
  0x5e   : > { %228 = sbr.rel (%p2509_p8) target bundleno = 2106 (0x83a), region = 40  ;;  %s2638_s12 = sand.u32 (!%p2509_p8), 1, %s2390_s19  }
  0x5f   : > { %s1916_s13 = sshll.u32 (!%p2509_p8), %s2638_s12, 3  ;;  %s231_s29 = scalar_lea.sflag (!%p2509_p8), [#allocation4], %s2638_s12 }
  0x60   : > { %s234_s17 = scalar_lea.vmem (!%p2509_p8), [#allocation3], %s1916_s13  ;;  %p2884_p4 = scmp.ne.s32.totalorder (!%p2509_p8), %s2877_s24, 0 }
  0x65   : > { %2373 = dma.done.wait (%p2884_p4), %s231_s29, 128  }
  0x66   : > { %2375 = vsyncadd (%p2884_p4), %s231_s29, 4294967168  ;;  %p2885_p5 = scmp.eq.s32.totalorder %s2490_s22, 0 }
  0x68   : > { %2377 = dma.done.wait (%p2885_p5), [#allocation7], 1024   ;;  %p2886_p8 = pmov %p2885_p5 }
  0x69   : > { %v2405_v0 = vmov 0.0|0.0   ;;  %vm2406_vm0 = vmmov 0   ;;  %v2407_v1 = vmov 0.0   ;;  %v270_v2 = vld [vmem:[#allocation6] sm:$0xff]  ;;  %v271_v3 = vld [vmem:[#allocation6 + $0x8] sm:$0xff]  ;;  %v272_v4 = vld [vmem:[#allocation6 + $0x10] sm:$0xff] }
  0x6a   : > { %2379 = vsyncadd (%p2886_p8), [#allocation7], 4294966272  ;;  %2096 = vmatprep.subr.bf16.mxu0 %v2405_v0  ;;  %2002 = vmatprep.mubr.msk.f32.mxu0 %vm2406_vm0, %v2407_v1  ;;  %v2097_v5 = vpack.c.bf16 %v271_v3, %v270_v2  ;;  %v273_v6 = vld [vmem:[#allocation6 + $0x18] sm:$0xff]  ;;  %vm281_vm1 = vcmask 261120   ;;  %v1920_v9 = vld [vmem:[%s2870_s2] ss:$0 sm:$0xff] }
  0x6b   : > { %2005 = vmatprep.subr.mxu1 %v2407_v1  ;;  %2007 = vmatprep.mubr.msk.f32.mxu1 %vm2406_vm0, %v2407_v1  ;;  %v2100_v7 = vpack.c.bf16 %v273_v6, %v272_v4  ;;  %v269_v8 = vld [vmem:[%s234_s17] sm:$0xff]  ;;  %s2408_s8 = smov 64   ;;  %s2409_s10 = smov 96   ;;  %vm358_vm2 = vcmask 31744   ;;  %vm433_vm3 = vcmask 64512   ;;  %vm691_vm4 = vcmask 64544  }
  0x6c   : > { %2098 = vmatpush3.bf16.msra.mxu0 %v2097_v5  ;;  %s2410_s11 = smov 92   ;;  %s2411_s28 = smov 124   ;;  %vm862_vm5 = vcmask 97344   ;;  %vm1033_vm6 = vcmask 130144   ;;  %vm1204_vm7 = vcmask 162944   ;;  %vm1375_vm8 = vcmask 195744  }
  0x6d   : > { %2099 = vmatprep.subr.bf16.mxu0 %v2405_v0  ;;  %s2412_s7 = smov 88   ;;  %s2413_s6 = smov 120   ;;  %vm1546_vm9 = vcmask 228544   ;;  %vm1717_vm10 = vcmask 261344  }
  0x6e   : > { %s2414_s30 = smov 116   ;;  %s2415_s15 = smov 84  }
  0x6f   : > { %s2416_s16 = smov 72   ;;  %s2417_s9 = smov 68  }
  0x70   : > { %2101 = vmatpush3.bf16.msra.mxu0 %v2100_v7  ;;  %s2418_s29 = smov 80   ;;  %s2419_s17 = smov 112  }
  0x71   : > { %2025 = vmatprep.subr.mxu0 %v2407_v1  ;;  %s2420_s24 = smov 76   ;;  %s2421_s26 = smov 108  }
  0x72   : > { %p2887_p0 = scmp.ne.s32.totalorder %s2882_s23, 0 }
  0x73   : > { %2003 = vmatmul.mubr.msk.f32.vlgmr.msra.gmra.mrb[0].mxu0 %vm281_vm1, %v269_v8 }
  0x74   : > { %2027 = vmatprep.mubr.msk.f32.mxu0 %vm2406_vm0, %v2407_v1 }
 0x146   : > { %v351_v10 = vpop.f32.mrb[0].mxu0 }
 0x147   : > { %v2666_v11 = vadd.f32 %v1920_v9, %v351_v10  ;;  %v2004_v12 = vpop.f32.mrb[1].mxu0 }
 0x149   : > { %445 = vrot.lane.b32.xlu1 %v2666_v11, %s2408_s8  ;;  %356 = vrot.lane.b32.xlu0 %v2666_v11, %s2409_s10  ;;  %s2422_s8 = smov 104   ;;  %s2423_s10 = smov 100  }
 0x14d   : > { %524 = vrot.lane.b32.xlu1 %v2666_v11, %s2410_s11  ;;  %s2424_s11 = smov 60  }
 0x151   : > { %522 = vrot.lane.b32.xlu1 %v2666_v11, %s2411_s28  ;;  %s2425_s28 = smov 52  }
 0x155   : > { %695 = vrot.lane.b32.xlu1 %v2666_v11, %s2412_s7  ;;  %s2426_s7 = smov 48  }
 0x159   : > { %693 = vrot.lane.b32.xlu1 %v2666_v11, %s2413_s6  ;;  %s2427_s6 = smov 56  }
 0x15d   : > { %864 = vrot.lane.b32.xlu1 %v2666_v11, %s2414_s30  ;;  %s2428_s30 = smov 40  }
 0x1bb   : > { %v446_v13 = vpop.permute.xlu1 %445  ;;  %v357_v14 = vpop.permute.xlu0 %356 }
 0x1bc   : > { %2006 = vmatpush3.xpose.msk.msra.mxu1 %vm358_vm2, %v357_v14 }
 0x1bd   : > { %2010 = vmatprep.subr.mxu1 %v2407_v1 }
 0x1bf   : > { %v2677_v15 = vpop.permute.xlu1 %524  ;;  %2008 = vmatmul.mubr.msk.f32.vlgmr.msra.gmra.mrb[0].mxu1 %vm358_vm2, %v2666_v11 }
 0x1c0   : > { %2011 = vmatpush3.msra.mxu1 %v446_v13  ;;  %2012 = vmatprep.mubr.msk.f32.mxu1 %vm2406_vm0, %v2407_v1 }
 0x1c1   : > { %2015 = vmatprep.subr.mxu1 %v2407_v1 }
 0x1c3   : > { %v2684_v16 = vpop.permute.xlu1 %522 }
 0x1c7   : > { %v696_v17 = vpop.permute.xlu1 %695 }
 0x1c8   : > { %2026 = vmatpush3.xpose.msk.msra.mxu0 %vm358_vm2, %v696_v17 }
 0x1c9   : > { %2035 = vmatprep.subr.mxu0 %v2407_v1 }
 0x1cb   : > { %v694_v18 = vpop.permute.xlu1 %693 }
 0x1cc   : > { %2028 = vmatmul.mubr.msk.f32.vlgmr.msra.gmra.mrb[2].mxu0 %vm358_vm2, %v694_v18 }
 0x1cd   : > { %2037 = vmatprep.mubr.msk.f32.mxu0 %vm2406_vm0, %v2407_v1 }
 0x1cf   : > { %v865_v28 = vpop.permute.xlu1 %864 }
 0x292   : > { %v429_v19 = vpop.f32.mrb[0].mxu1 }
 0x293   : > { %v2009_v20 = vpop.f32.mrb[1].mxu1  ;;  %v434_v21 = vsel %vm433_vm3, %v429_v19, -inf }
 0x294   : > { %435 = vmax.xlane.f32.xlu0 %v434_v21 }
 0x29f   : > { %v2692_v22 = vpop.f32.mrb[2].mxu0 }
 0x2a0   : > { %v2029_v23 = vpop.f32.mrb[3].mxu0  ;;  %v771_v31 = vsel %vm433_vm3, %v2692_v22, -inf }
 0x2aa   : > { %866 = vrot.lane.b32.xlu0 %v2666_v11, %s2415_s15  ;;  %s2429_s15 = smov 44  }
 0x2ae   : > { %1379 = vrot.lane.b32.xlu0 %v2666_v11, %s2416_s16  ;;  %s2430_s16 = smov 36  }
 0x2b2   : > { %1550 = vrot.lane.b32.xlu0 %v2666_v11, %s2417_s9  ;;  %s2431_s9 = smov 4  }
 0x321   : > { %v436_v24 = vpop.xlane.xlu0 %435 }
 0x322   : > { %v437_v25 = vsub.f32 %v429_v19, %v436_v24 }
 0x324   : > { %v438_v26 = vmul.f32 1.442695, %v437_v25 }
 0x325   : > { %v867_v27 = vpop.permute.xlu0 %866 }
 0x326   : > { %2210 = vpow2.f32 %v438_v26  ;;  %2036 = vmatpush3.xpose.msk.msra.mxu0 %vm358_vm2, %v867_v27 }
 0x327   : > { %2045 = vmatprep.subr.mxu0 %v2407_v1 }
 0x329   : > { %2038 = vmatmul.mubr.msk.f32.vlgmr.msra.gmra.mrb[4].mxu0 %vm358_vm2, %v865_v28  ;;  %v1380_v38 = vpop.permute.xlu0 %1379 }
 0x32a   : > { %2047 = vmatprep.mubr.msk.f32.mxu0 %vm2406_vm0, %v2407_v1 }
 0x32d   : > { %v1551_v41 = vpop.permute.xlu0 %1550 }
 0x330   : > { %v2211_v29 = vpop.eup %2210 }
 0x331   : > { %v440_v30 = vsel %vm433_vm3, %v2211_v29, 0.0 }
 0x332   : > { %441 = vadd.xlane.f32.xlu1 %v440_v30 }
 0x343   : > { %1037 = vrot.lane.b32.xlu1 %v2666_v11, %s2418_s29  ;;  %s2432_s29 = smov 8  }
 0x347   : > { %1035 = vrot.lane.b32.xlu1 %v2666_v11, %s2419_s17  ;;  %s2433_s17 = smov 12  }
 0x34b   : > { %1208 = vrot.lane.b32.xlu1 %v2666_v11, %s2420_s24  ;;  %s2434_s24 = smov 16  }
 0x34f   : > { %1206 = vrot.lane.b32.xlu1 %v2666_v11, %s2421_s26  ;;  %s2435_s26 = smov 20  }
 0x353   : > { %1377 = vrot.lane.b32.xlu1 %v2666_v11, %s2422_s8  ;;  %s2436_s8 = smov 24  }
 0x357   : > { %1548 = vrot.lane.b32.xlu1 %v2666_v11, %s2423_s10  ;;  %s2437_s10 = smov 28  }
 0x37b   : > { %772 = vmax.xlane.f32.xlu1 %v771_v31 }
 0x3bf   : > { %v442_v32 = vpop.xlane.xlu1 %441 }
 0x3c0   : > { %2212 = vrcp.f32 %v442_v32 }
 0x3c3   : > { %v1038_v33 = vpop.permute.xlu1 %1037 }
 0x3c4   : > { %2046 = vmatpush3.xpose.msk.msra.mxu0 %vm358_vm2, %v1038_v33 }
 0x3c5   : > { %2055 = vmatprep.subr.mxu0 %v2407_v1 }
 0x3c7   : > { %v1036_v34 = vpop.permute.xlu1 %1035 }
 0x3c8   : > { %2048 = vmatmul.mubr.msk.f32.vlgmr.msra.gmra.mrb[6].mxu0 %vm358_vm2, %v1036_v34 }
 0x3c9   : > { %2057 = vmatprep.mubr.msk.f32.mxu0 %vm2406_vm0, %v2407_v1 }
 0x3ca   : > { %v2213_v35 = vpop.eup %2212 }
 0x3cb   : > { %v444_v36 = vmul.f32 %v2213_v35, %v2211_v29  ;;  %v1209_v37 = vpop.permute.xlu1 %1208 }
 0x3cc   : > { %2056 = vmatpush3.xpose.msk.msra.mxu0 %vm358_vm2, %v1209_v37 }
 0x3cd   : > { %2013 = vmatmul.mubr.msk.f32.vlgmr.msra.gmra.mrb[2].mxu1 %vm433_vm3, %v444_v36  ;;  %2065 = vmatprep.subr.mxu0 %v2407_v1 }
 0x3ce   : > { %2016 = vmatpush3.xpose.msk.msra.mxu1 %vm358_vm2, %v2677_v15  ;;  %2017 = vmatprep.mubr.msk.f32.mxu1 %vm2406_vm0, %v2407_v1 }
 0x3cf   : > { %v1207_v39 = vpop.permute.xlu1 %1206  ;;  %2020 = vmatprep.subr.mxu1 %v2407_v1 }
 0x3d0   : > { %2058 = vmatmul.mubr.msk.f32.vlgmr.msra.gmra.mrb[8].mxu0 %vm358_vm2, %v1207_v39 }
 0x3d1   : > { %2066 = vmatpush3.xpose.msk.msra.mxu0 %vm358_vm2, %v1380_v38  ;;  %2018 = vmatmul.mubr.msk.f32.vlgmr.msra.gmra.mrb[4].mxu1 %vm358_vm2, %v2684_v16 }
 0x3d2   : > { %2067 = vmatprep.mubr.msk.f32.mxu0 %vm2406_vm0, %v2407_v1  ;;  %2075 = vmatprep.subr.mxu0 %v2407_v1 }
 0x3d3   : > { %v1378_v40 = vpop.permute.xlu1 %1377  ;;  %2022 = vmatprep.mubr.msk.f32.mxu1 %vm2406_vm0, %v2407_v1 }
 0x3d4   : > { %2068 = vmatmul.mubr.msk.f32.vlgmr.msra.gmra.mrb[10].mxu0 %vm358_vm2, %v1378_v40 }
 0x3d5   : > { %2076 = vmatpush3.xpose.msk.msra.mxu0 %vm358_vm2, %v1551_v41  ;;  %2077 = vmatprep.mubr.msk.f32.mxu0 %vm2406_vm0, %v2407_v1 }
 0x3d6   : > { %2102 = vmatprep.subr.bf16.mxu0 %v2405_v0 }
 0x3d7   : > { %v1549_v42 = vpop.permute.xlu1 %1548 }
 0x3d8   : > { %2078 = vmatmul.mubr.msk.f32.vlgmr.msra.gmra.mrb[12].mxu0 %vm358_vm2, %v1549_v42 }
 0x3d9   : > { %2093 = vmatprep.mubr.msk.f32.mxu0 %vm2406_vm0, %v2407_v1 }
 0x3fc   : > { %v938_v43 = vpop.f32.mrb[4].mxu0 }
 0x3fd   : > { %v2039_v44 = vpop.f32.mrb[5].mxu0  ;;  %v942_v60 = vsel %vm433_vm3, %v938_v43, -inf }
 0x408   : > { %v773_v45 = vpop.xlane.xlu1 %772 }
 0x409   : > { %v774_v46 = vsub.f32 %v2692_v22, %v773_v45 }
 0x40b   : > { %v775_v49 = vmul.f32 1.442695, %v774_v46 }
 0x40d   : > { %2214 = vpow2.f32 %v775_v49 }
 0x417   : > { %v2747_v2 = vpop.eup %2214 }
 0x418   : > { %v777_v4 = vsel %vm433_vm3, %v2747_v2, 0.0 }
 0x49b   : > { %v1109_v47 = vpop.f32.mrb[6].mxu0 }
 0x49c   : > { %v2049_v48 = vpop.f32.mrb[7].mxu0  ;;  %v1113_v3 = vsel %vm433_vm3, %v1109_v47, -inf }
 0x4a0   : > { %v517_v50 = vpop.f32.mrb[2].mxu1 }
 0x4a1   : > { %521 = vst.msk [vmem:[#allocation2] sm:$0xff] %vm358_vm2, %v517_v50  ;;  %v2014_v51 = vpop.f32.mrb[3].mxu1 }
 0x4a3   : > { %v1280_v52 = vpop.f32.mrb[8].mxu0 }
 0x4a4   : > { %v596_v53 = vpop.f32.mrb[4].mxu1  ;;  %v2059_v54 = vpop.f32.mrb[9].mxu0  ;;  %v1284_v55 = vsel %vm433_vm3, %v1280_v52, -inf }
 0x4a5   : > { %v2019_v56 = vpop.f32.mrb[5].mxu1  ;;  %1285 = vmax.xlane.f32.xlu1 %v1284_v55  ;;  %v600_v57 = vsel %vm433_vm3, %v596_v53, -inf }
 0x4a6   : > { %601 = vmax.xlane.f32.xlu0 %v600_v57 }
 0x4a7   : > { %v1451_v58 = vpop.f32.mrb[10].mxu0 }
 0x4a8   : > { %v2069_v59 = vpop.f32.mrb[11].mxu0  ;;  %v1455_v5 = vsel %vm433_vm3, %v1451_v58, -inf }
 0x4aa   : > { %943 = vmax.xlane.f32.xlu0 %v942_v60 }
 0x4ab   : > { %v1622_v61 = vpop.f32.mrb[12].mxu0 }
 0x4ac   : > { %v2079_v62 = vpop.f32.mrb[13].mxu0  ;;  %v1626_v63 = vsel %vm433_vm3, %v1622_v61, -inf }
 0x4ad   : > { %1627 = vmax.xlane.f32.xlu1 %v1626_v63 }
 0x4ae   : > { %1114 = vmax.xlane.f32.xlu0 %v1113_v3 }
 0x4b1   : > { %778 = vadd.xlane.f32.xlu1 %v777_v4 }
 0x4b2   : > { %1456 = vmax.xlane.f32.xlu0 %v1455_v5 }
 0x532   : > { %v1286_v6 = vpop.xlane.xlu1 %1285 }
 0x533   : > { %v602_v7 = vpop.xlane.xlu0 %601  ;;  %v1287_v8 = vsub.f32 %v1280_v52, %v1286_v6 }
 0x534   : > { %v603_v18 = vsub.f32 %v596_v53, %v602_v7 }
 0x535   : > { %v1288_v12 = vmul.f32 1.442695, %v1287_v8 }
 0x536   : > { %v604_v23 = vmul.f32 1.442695, %v603_v18 }
 0x537   : > { %v944_v9 = vpop.xlane.xlu0 %943 }
 0x538   : > { %v945_v10 = vsub.f32 %v938_v43, %v944_v9  ;;  %v1719_v9 = vld [vmem:[#allocation8] sm:$0xff] }
 0x53a   : > { %v946_v13 = vmul.f32 1.442695, %v945_v10  ;;  %v1628_v14 = vpop.xlane.xlu1 %1627  ;;  %v1720_v10 = vld [vmem:[#allocation8 + $0x8] sm:$0xff] }
 0x53b   : > { %v1629_v15 = vsub.f32 %v1622_v61, %v1628_v14  ;;  %v1115_v16 = vpop.xlane.xlu0 %1114  ;;  %v1722_v14 = vld [vmem:[#allocation8 + $0x18] sm:$0xff] }
 0x53c   : > { %2216 = vpow2.f32 %v946_v13  ;;  %v1116_v17 = vsub.f32 %v1109_v47, %v1115_v16  ;;  %v2103_v13 = vpack.c.bf16 %v1720_v10, %v1719_v9 }
 0x53d   : > { %2218 = vpow2.f32 %v1288_v12  ;;  %v1630_v19 = vmul.f32 1.442695, %v1629_v15 }
 0x53e   : > { %v1117_v20 = vmul.f32 1.442695, %v1116_v17  ;;  %v779_v37 = vpop.xlane.xlu1 %778  ;;  %2104 = vmatpush3.bf16.msra.mxu0 %v2103_v13 }
 0x53f   : > { %v1457_v21 = vpop.xlane.xlu0 %1456  ;;  %2105 = vmatprep.subr.bf16.mxu0 %v2405_v0 }
 0x540   : > { %2220 = vpow2.f32 %v1117_v20  ;;  %v1458_v22 = vsub.f32 %v1451_v58, %v1457_v21 }
 0x541   : > { %2222 = vpow2.f32 %v1630_v19 }
 0x542   : > { %v1459_v24 = vmul.f32 1.442695, %v1458_v22 }
 0x544   : > { %2224 = vpow2.f32 %v1459_v24 }
 0x545   : > { %2226 = vpow2.f32 %v604_v23 }
 0x546   : > { %v2753_v25 = vpop.eup %2216 }
 0x547   : > { %v948_v26 = vsel %vm433_vm3, %v2753_v25, 0.0  ;;  %v2757_v27 = vpop.eup %2218 }
 0x548   : > { %949 = vadd.xlane.f32.xlu0 %v948_v26  ;;  %v1290_v29 = vsel %vm433_vm3, %v2757_v27, 0.0 }
 0x54a   : > { %v2759_v28 = vpop.eup %2220 }
 0x54b   : > { %v1119_v30 = vsel %vm433_vm3, %v2759_v28, 0.0  ;;  %v2765_v31 = vpop.eup %2222 }
 0x54c   : > { %1291 = vadd.xlane.f32.xlu0 %v1290_v29  ;;  %1120 = vadd.xlane.f32.xlu1 %v1119_v30  ;;  %v1632_v34 = vsel %vm433_vm3, %v2765_v31, 0.0  ;;  %v1946_v29 = vld [vmem:[%s2872_s4] ss:$0 sm:$0xff] }
 0x54e   : > { %v2767_v32 = vpop.eup %2224 }
 0x54f   : > { %v1461_v33 = vsel %vm433_vm3, %v2767_v32, 0.0  ;;  %v2227_v35 = vpop.eup %2226 }
 0x550   : > { %1462 = vadd.xlane.f32.xlu1 %v1461_v33  ;;  %1633 = vadd.xlane.f32.xlu0 %v1632_v34  ;;  %v606_v36 = vsel %vm433_vm3, %v2227_v35, 0.0 }
 0x554   : > { %607 = vadd.xlane.f32.xlu0 %v606_v36 }
 0x561   : > { %611 = vrot.lane.b32.xlu1 %v2666_v11, %s2424_s11 }
 0x565   : > { %953 = vrot.lane.b32.xlu1 %v2666_v11, %s2425_s28 }
 0x569   : > { %1124 = vrot.lane.b32.xlu1 %v2666_v11, %s2426_s7  ;;  %s1949_s7 = sshll.u32 %s2490_s22, 7 }
 0x56a   : > { %782 = vrot.lane.b32.xlu0 %v2666_v11, %s2427_s6  ;;  %s268_s6 = scalar_lea.vmem [#allocation9], %s1916_s13  ;;  %s2438_s13 = smov [#allocation9]  }
 0x56d   : > { %1466 = vrot.lane.b32.xlu1 %v2666_v11, %s2428_s30  ;;  %s1819_s30 = sshll.u32 %s268_s6, 4  ;;  %s2825_s30 = int_to_ptr.vmem [resolvable:$true] %s1819_s30 }
 0x56e   : > { %1295 = vrot.lane.b32.xlu0 %v2666_v11, %s2429_s15  ;;  %s2328_s22 = scalar_lea.vmem %s2825_s30, 128 }
 0x56f   : > { %p2329_p11 = scmp.ne.s32.totalorder %s2825_s30, %s2328_s22 }
 0x571   : > { %p2330_p1 = pnand %p2329_p11, %p2887_p0 }
 0x572   : > { %1637 = vrot.lane.b32.xlu0 %v2666_v11, %s2430_s16 }
 0x573   : > { %p2331_p3 = pneg %p2330_p1 }
 0x5d5   : > { %v950_v38 = vpop.xlane.xlu0 %949 }
 0x5d9   : > { %v1292_v39 = vpop.xlane.xlu0 %1291  ;;  %v1121_v40 = vpop.xlane.xlu1 %1120 }
 0x5dd   : > { %v1634_v41 = vpop.xlane.xlu0 %1633  ;;  %v1463_v42 = vpop.xlane.xlu1 %1462 }
 0x5e1   : > { %v608_v43 = vpop.xlane.xlu0 %607  ;;  %v612_v44 = vpop.permute.xlu1 %611 }
 0x5e2   : > { %2228 = vrcp.f32 %v608_v43  ;;  %2021 = vmatpush3.msra.mxu1 %v612_v44 }
 0x5e3   : > { %2030 = vmatprep.subr.mxu1 %v2407_v1  ;;  %2230 = vrcp.f32 %v779_v37 }
 0x5e4   : > { %2232 = vrcp.f32 %v950_v38 }
 0x5e5   : > { %2234 = vrcp.f32 %v1121_v40  ;;  %v783_v48 = vpop.permute.xlu0 %782  ;;  %v954_v49 = vpop.permute.xlu1 %953 }
 0x5e6   : > { %2236 = vrcp.f32 %v1292_v39 }
 0x5e7   : > { %2238 = vrcp.f32 %v1463_v42 }
 0x5e8   : > { %2240 = vrcp.f32 %v1634_v41 }
 0x5e9   : > { %v1125_v53 = vpop.permute.xlu1 %1124  ;;  %v1296_v56 = vpop.permute.xlu0 %1295 }
 0x5ec   : > { %v2229_v45 = vpop.eup %2228 }
 0x5ed   : > { %v610_v46 = vmul.f32 %v2229_v45, %v2227_v35  ;;  %v2231_v47 = vpop.eup %2230  ;;  %v1467_v59 = vpop.permute.xlu1 %1466 }
 0x5ee   : > { %v781_v11 = vmul.f32 %v2231_v47, %v2747_v2  ;;  %v2233_v50 = vpop.eup %2232  ;;  %v1638_v62 = vpop.permute.xlu0 %1637 }
 0x5ef   : > { %2023 = vmatmul.mubr.msk.f32.vlgmr.msra.gmra.mrb[6].mxu1 %vm433_vm3, %v610_v46  ;;  %v952_v51 = vmul.f32 %v2233_v50, %v2753_v25  ;;  %v2235_v52 = vpop.eup %2234 }
 0x5f0   : > { %2031 = vmatpush3.msra.mxu1 %v783_v48  ;;  %2032 = vmatprep.mubr.msk.f32.mxu1 %vm2406_vm0, %v2407_v1  ;;  %v1123_v54 = vmul.f32 %v2235_v52, %v2759_v28  ;;  %v2237_v55 = vpop.eup %2236 }
 0x5f1   : > { %2040 = vmatprep.subr.mxu1 %v2407_v1  ;;  %v1294_v57 = vmul.f32 %v2237_v55, %v2757_v27  ;;  %v2239_v58 = vpop.eup %2238 }
 0x5f2   : > { %v1465_v60 = vmul.f32 %v2239_v58, %v2767_v32  ;;  %v2241_v61 = vpop.eup %2240 }
 0x5f3   : > { %2033 = vmatmul.mubr.msk.f32.vlgmr.msra.gmra.mrb[8].mxu1 %vm433_vm3, %v781_v11  ;;  %v1636_v63 = vmul.f32 %v2241_v61, %v2765_v31 }
 0x5f4   : > { %2041 = vmatpush3.msra.mxu1 %v954_v49  ;;  %2042 = vmatprep.mubr.msk.f32.mxu1 %vm2406_vm0, %v2407_v1 }
 0x5f5   : > { %2050 = vmatprep.subr.mxu1 %v2407_v1 }
 0x5f7   : > { %2043 = vmatmul.mubr.msk.f32.vlgmr.msra.gmra.mrb[10].mxu1 %vm433_vm3, %v952_v51 }
 0x5f8   : > { %2051 = vmatpush3.msra.mxu1 %v1125_v53  ;;  %2052 = vmatprep.mubr.msk.f32.mxu1 %vm2406_vm0, %v2407_v1 }
 0x5f9   : > { %2060 = vmatprep.subr.mxu1 %v2407_v1 }
 0x5fb   : > { %2053 = vmatmul.mubr.msk.f32.vlgmr.msra.gmra.mrb[12].mxu1 %vm433_vm3, %v1123_v54 }
 0x5fc   : > { %2061 = vmatpush3.msra.mxu1 %v1296_v56  ;;  %2062 = vmatprep.mubr.msk.f32.mxu1 %vm2406_vm0, %v2407_v1 }
 0x5fd   : > { %2070 = vmatprep.subr.mxu1 %v2407_v1 }
 0x5ff   : > { %2063 = vmatmul.mubr.msk.f32.vlgmr.msra.gmra.mrb[14].mxu1 %vm433_vm3, %v1294_v57 }
 0x600   : > { %2071 = vmatpush3.msra.mxu1 %v1467_v59  ;;  %2072 = vmatprep.mubr.msk.f32.mxu1 %vm2406_vm0, %v2407_v1 }
 0x601   : > { %2080 = vmatprep.subr.mxu1 %v2407_v1 }
 0x603   : > { %2073 = vmatmul.mubr.msk.f32.vlgmr.msra.gmra.mrb[16].mxu1 %vm433_vm3, %v1465_v60 }
 0x604   : > { %2081 = vmatpush3.msra.mxu1 %v1638_v62  ;;  %2082 = vmatprep.mubr.msk.f32.mxu1 %vm2406_vm0, %v2407_v1  ;;  %v1721_v1 = vld [vmem:[#allocation8 + $0x10] sm:$0xff] }
 0x605   : > { %v2106_v15 = vpack.c.bf16 %v1722_v14, %v1721_v1 }
 0x607   : > { %2083 = vmatmul.mubr.msk.f32.vlgmr.msra.gmra.mrb[18].mxu1 %vm433_vm3, %v1636_v63  ;;  %2107 = vmatpush3.bf16.msra.mxu0 %v2106_v15 }
 0x6c2   : > { %v683_v2 = vpop.f32.mrb[6].mxu1 }
 0x6c3   : > { %688 = vrot.lane.b32.xlu1 %v683_v2, %s2431_s9  ;;  %v2024_v3 = vpop.f32.mrb[7].mxu1  ;;  %s2823_s9 = scalar_lea.hbm %s2873_s5, %s1949_s7 }
 0x6c6   : > { %v854_v4 = vpop.f32.mrb[8].mxu1 }
 0x6c7   : > { %859 = vrot.lane.b32.xlu0 %v854_v4, %s2432_s29  ;;  %v2034_v5 = vpop.f32.mrb[9].mxu1  ;;  %s1806_s29 = scalar_lea.sflag [#allocation5], %s2638_s12 }
 0x6ca   : > { %v1025_v6 = vpop.f32.mrb[10].mxu1 }
 0x6cb   : > { %1030 = vrot.lane.b32.xlu1 %v1025_v6, %s2433_s17  ;;  %v2044_v7 = vpop.f32.mrb[11].mxu1  ;;  %s2332_s17 = sshll.u32 %s2438_s13, 4  ;;  %s2333_s17 = int_to_ptr.vmem [resolvable:$false] %s2332_s17 }
 0x6cc   : > { %p2335_p7 = scmp.lt.s32.totalorder %s2825_s30, %s2333_s17 }
 0x6ce   : > { %v1196_v8 = vpop.f32.mrb[12].mxu1 }
 0x6cf   : > { %1201 = vrot.lane.b32.xlu0 %v1196_v8, %s2434_s24  ;;  %v2054_v12 = vpop.f32.mrb[13].mxu1  ;;  %s2334_s24 = scalar_lea.vmem %s2333_s17, 256 }
 0x6d0   : > { %p2336_p9 = scmp.lt.s32.totalorder %s2334_s24, %s2328_s22 }
 0x6d2   : > { %v1367_v16 = vpop.f32.mrb[14].mxu1  ;;  %p2337_p12 = por %p2336_p9, %p2335_p7 }
 0x6d3   : > { %1372 = vrot.lane.b32.xlu1 %v1367_v16, %s2435_s26  ;;  %v2064_v17 = vpop.f32.mrb[15].mxu1 }
 0x6d4   : > { %p2338_p2 = pnand %p2337_p12, %p2331_p3 }
 0x6d6   : > { %v1538_v18 = vpop.f32.mrb[16].mxu1 }
 0x6d7   : > { %1543 = vrot.lane.b32.xlu0 %v1538_v18, %s2436_s8  ;;  %v2074_v19 = vpop.f32.mrb[17].mxu1 }
 0x6da   : > { %v1709_v20 = vpop.f32.mrb[18].mxu1 }
 0x6db   : > { %1714 = vrot.lane.b32.xlu1 %v1709_v20, %s2437_s10  ;;  %v2084_v21 = vpop.f32.mrb[19].mxu1 }
 0x735   : > { %v689_v22 = vpop.permute.xlu1 %688 }
 0x736   : > { %692 = vst.msk [vmem:[#allocation2] sm:$0xff] %vm691_vm4, %v689_v22 }
 0x739   : > { %v860_v23 = vpop.permute.xlu0 %859 }
 0x73a   : > { %863 = vst.msk [vmem:[#allocation2] sm:$0xff] %vm862_vm5, %v860_v23 }
 0x73d   : > { %v1031_v0 = vpop.permute.xlu1 %1030 }
 0x73e   : > { %1034 = vst.msk [vmem:[#allocation2] sm:$0xff] %vm1033_vm6, %v1031_v0 }
 0x741   : > { %v1202_v24 = vpop.permute.xlu0 %1201 }
 0x742   : > { %1205 = vst.msk [vmem:[#allocation2] sm:$0xff] %vm1204_vm7, %v1202_v24 }
 0x745   : > { %v1373_v25 = vpop.permute.xlu1 %1372 }
 0x746   : > { %1376 = vst.msk [vmem:[#allocation2] sm:$0xff] %vm1375_vm8, %v1373_v25 }
 0x749   : > { %v1544_v26 = vpop.permute.xlu0 %1543 }
 0x74a   : > { %1547 = vst.msk [vmem:[#allocation2] sm:$0xff] %vm1546_vm9, %v1544_v26 }
 0x74d   : > { %v1715_v27 = vpop.permute.xlu1 %1714 }
 0x74e   : > { %1718 = vst.msk [vmem:[#allocation2] sm:$0xff] %vm1717_vm10, %v1715_v27 }
 0x755   : > { %v1724_v28 = vld [vmem:[#allocation2] sm:$0xff] }
 0x756   : > { %2094 = vmatmul.mubr.msk.f32.vlgmr.msra.gmra.mrb[14].mxu0 %vm281_vm1, %v1724_v28 }
 0x829   : > { %v1800_v30 = vpop.f32.mrb[14].mxu0 }
 0x82a   : > { %v1801_v31 = vadd.f32 %v1946_v29, %v1800_v30  ;;  %v2095_v32 = vpop.f32.mrb[15].mxu0 }
 0x82c   : > { %1804 = vst.msk [vmem:[%s268_s6] sm:$0xff] %vm281_vm1, %v1801_v31 }
 0x82d   : > { %2341 = shalt.err (!%p2338_p2)
}
 0x82e   : > { %s2342_s12 = scalar_lea.hbm %s2823_s9, 128  ;;  %s2346_s10 = scalar_lea.hbm %s2873_s5, 256 }
 0x82f   : > { %p2343_p13 = scmp.ne.s32.totalorder %s2823_s9, %s2342_s12  ;;  %p2347_p4 = scmp.lt.u32.totalorder %s2823_s9, %s2873_s5 }
 0x830   : > { %p2348_p5 = scmp.lt.u32.totalorder %s2346_s10, %s2342_s12  ;;  %p2350_p11 = scmp.lt.u32.totalorder %s2342_s12, %s2823_s9 }
 0x831   : > { %p2344_p6 = pnand %p2343_p13, %p2887_p0 }
 0x832   : > { %p2349_p8 = por %p2348_p5, %p2347_p4 }
 0x833   : > { %p2345_p10 = pneg %p2344_p6 }
 0x834   : > { %p2351_p1 = por %p2350_p11, %p2349_p8 }
 0x836   : > { %p2352_p3 = pnand %p2351_p1, %p2345_p10 }
 0x838   : > { %2355 = shalt.err (!%p2352_p3)
}
 0x839   : > { %2118 = dma.vmem_to_hbm [thread:$0]  (%p2887_p0), %s2825_s30, 128, %s2823_s9, %s1806_s29  }
 0x83a PF: > { %s1831_s7 = sand.u32 1, %s2386_s18   ;;  %p2888_p7 = scmp.ne.s32.totalorder %s2878_s25, 0 }
 0x83b   : > { %p2889_p9 = scmp.ge.s32.totalorder %s2398_s21, 2  ;;  %s1832_s6 = scalar_lea.sflag [#allocation5], %s1831_s7 }
 0x83d   : > { %p2132_p12 = pnand %p2889_p9, %p2888_p7 }
 0x83f   : > { %2381 = dma.done.wait (!%p2132_p12), %s1832_s6, 128  }
 0x840   : > { %2383 = vsyncadd (!%p2132_p12), %s1832_s6, 4294967168  ;;  %p19_p2 = scmp.ge.s32.totalorder %s2579_s14, 4   ;;  %s2890_s18 = smov %s2390_s19 }
 0x841   : > { %s2891_s19 = smov %s2394_s20  ;;  %s2892_s20 = smov %s2595_s27 }
 0x842   : > { %s2893_s21 = smov %s2579_s14  ;;  %21 = sbr.rel (!%p19_p2) target bundleno = 6 (0x6), region = 93 }
 0x849   :  { %1837 = vsyncpa [#allocation4], 1 }
 0x84a   :  { %1839 = vsyncpa [#allocation4 + $0x1], 1 }
 0x84b   :  { %1840 = vsyncpa [#allocation7], 1 }
 0x84c   :  { %1841 = vsyncpa [#allocation5], 1 }
 0x84d   :  { %1843 = vsyncpa [#allocation5 + $0x1], 1 }

</bundles_post_ra>
